<compile_context>
chip_gen: v5e
topology: v5e:2x2
jax: 0.10.0
libtpu: 0.0.40
codegen_flags: <defaults>
</compile_context>

<pallas_src>
import jax
import jax.numpy as jnp
from jax.experimental import pallas as pl
from jax.experimental.pallas import tpu as pltpu

HIDDEN = 256
TB_CAP = 2048                      # max rows per grid step
VMEM_LIMIT = 48 * 1024 * 1024      # explicit scoped-VMEM limit (v5e default is 16 MiB)


def _round_up(n, m):
    return ((n + m - 1) // m) * m


# --------------------------------------------------------------------------
# Kernel: one (model, row-tile) grid point.
#   x @ W1 + b1 -> ReLU -> @ W2 + b2 -> ReLU -> {@ Wi + bi, @ Wp + bp}
# All matmuls accumulate in f32 on the MXU; MXU inputs are the weight dtype
# (bf16 by default). Outputs are stored lane-narrow (5 / 7 lanes).
# --------------------------------------------------------------------------
def dqnet_kernel(x_ref, w1_ref, b1_ref, w2_ref, b2_ref,
                 wi_ref, bi_ref, wp_ref, bp_ref, inv_ref, prc_ref):
    wd = w1_ref.dtype                      # weight dtype (bf16 or f32)
    x = x_ref[...].astype(wd)              # in-kernel cast: VPU op on VMEM-resident data

    h1 = jnp.dot(x, w1_ref[...], preferred_element_type=jnp.float32) + b1_ref[...]
    h1 = jnp.maximum(h1, 0.0).astype(wd)

    h2 = jnp.dot(h1, w2_ref[...], preferred_element_type=jnp.float32) + b2_ref[...]
    h2 = jnp.maximum(h2, 0.0).astype(wd)

    inv = jnp.dot(h2, wi_ref[...], preferred_element_type=jnp.float32) + bi_ref[...]
    prc = jnp.dot(h2, wp_ref[...], preferred_element_type=jnp.float32) + bp_ref[...]
    inv_ref[...] = inv.astype(inv_ref.dtype)
    prc_ref[...] = prc.astype(prc_ref.dtype)


def _choose_tile(batch, num_models):
    """Row-tile size. Full-dim tiles avoid any padding for batch <= TB_CAP;
    single-model batches that split evenly are cut into >= 2 tiles so the
    batch ('parallel') axis can shard across v7x's two TensorCores."""
    if batch > TB_CAP:
        return TB_CAP                      # ragged last block handled by Pallas
    if num_models == 1 and batch >= 16 and batch % 16 == 0:
        return batch // 2                  # even split, still a multiple of 8
    return batch                           # block dims == array dims: always legal


def _dqnet_pallas(x, arrs):
    """Run the kernel over (model, row-tile) grid. Returns (inv, prc) with a
    leading model axis: (M, batch, ni) and (M, batch, np)."""
    names = ("w1", "b1", "w2", "b2", "wi", "bi", "wp", "bp")
    w1, b1, w2, b2, wi, bi, wp, bp = (arrs[k] for k in names)
    num_models, input_dim, hidden = w1.shape
    ni = wi.shape[-1]
    np_ = wp.shape[-1]
    batch = x.shape[0]

    tb = _choose_tile(batch, num_models)
    nbt = pl.cdiv(batch, tb)

    if num_models > 1:
        # Model-major: weights DMA'd once per model; one model per v7x core.
        grid = (num_models, nbt)
        xmap = lambda m, i: (i, 0)
        wmap = lambda m, i: (m, 0, 0)
        omap = lambda m, i: (m, i, 0)
        dims = ("parallel", "parallel")
    else:
        # Single model: batch tiles are the (only, parallel) grid axis.
        grid = (nbt,)
        xmap = lambda i: (i, 0)
        wmap = lambda i: (0, 0, 0)
        omap = lambda i: (0, i, 0)
        dims = ("parallel",)

    flops = 2 * num_models * batch * (
        input_dim * hidden + hidden * hidden + hidden * (ni + np_))
    bytes_accessed = (
        num_models * x.size * x.dtype.itemsize
        + sum(a.size * a.dtype.itemsize for a in (w1, b1, w2, b2, wi, bi, wp, bp))
        + num_models * batch * (ni + np_) * 4)

    inv, prc = pl.pallas_call(
        dqnet_kernel,
        out_shape=(jax.ShapeDtypeStruct((num_models, batch, ni), jnp.float32),
                   jax.ShapeDtypeStruct((num_models, batch, np_), jnp.float32)),
        grid=grid,
        in_specs=[
            pl.BlockSpec((tb, input_dim), xmap),               # x (shared across models)
            pl.BlockSpec((None, input_dim, hidden), wmap),     # w1
            pl.BlockSpec((None, 1, hidden), wmap),             # b1
            pl.BlockSpec((None, hidden, hidden), wmap),        # w2
            pl.BlockSpec((None, 1, hidden), wmap),             # b2
            pl.BlockSpec((None, hidden, ni), wmap),            # inventory head W
            pl.BlockSpec((None, 1, ni), wmap),                 # inventory head b
            pl.BlockSpec((None, hidden, np_), wmap),           # price head W
            pl.BlockSpec((None, 1, np_), wmap),                # price head b
        ],
        out_specs=(pl.BlockSpec((None, tb, ni), omap),
                   pl.BlockSpec((None, tb, np_), omap)),
        compiler_params=pltpu.CompilerParams(
            dimension_semantics=dims,
            vmem_limit_bytes=VMEM_LIMIT),
        cost_estimate=pl.CostEstimate(flops=flops, transcendentals=0,
                                      bytes_accessed=bytes_accessed),
    )(x, w1, b1, w2, b2, wi, bi, wp, bp)

    return inv, prc


# --------------------------------------------------------------------------
# Parameter handling
# --------------------------------------------------------------------------
def init_params(key, input_dim, inventory_size, price_size, hidden=HIDDEN):
    """Raw per-model params. Weights are (in, out) == PyTorch W.T; biases (1, out)."""
    ks = jax.random.split(key, 8)

    def linear(kw, kb, fan_in, fan_out):
        bound = 1.0 / jnp.sqrt(jnp.float32(fan_in))  # nn.Linear default init
        w = jax.random.uniform(kw, (fan_in, fan_out), jnp.float32, -bound, bound)
        b = jax.random.uniform(kb, (1, fan_out), jnp.float32, -bound, bound)
        return w, b

    w1, b1 = linear(ks[0], ks[1], input_dim, hidden)
    w2, b2 = linear(ks[2], ks[3], hidden, hidden)
    wi, bi = linear(ks[4], ks[5], hidden, inventory_size)
    wp, bp = linear(ks[6], ks[7], hidden, price_size)

    online = dict(w1=w1, b1=b1, w2=w2, b2=b2, wi=wi, bi=bi, wp=wp, bp=bp)
    target = dict(online)  # deepcopy-equivalent values at init (arrays are immutable)
    return {"online": online, "target": target}


def pack_params(raw, models=("online", "target"), weight_dtype=jnp.bfloat16):
    """Cast weights to the MXU input dtype (bf16 default: full-rate MXU on
    v5e/v6e/v7x + half the weight DMA; biases stay f32), stack models on a
    leading axis for the fused path, and pre-split per-model views so the
    single-model forward does no per-call slicing."""
    def prep(p):
        return dict(
            w1=p["w1"].astype(weight_dtype), b1=p["b1"].astype(jnp.float32),
            w2=p["w2"].astype(weight_dtype), b2=p["b2"].astype(jnp.float32),
            wi=p["wi"].astype(weight_dtype), bi=p["bi"].astype(jnp.float32),
            wp=p["wp"].astype(weight_dtype), bp=p["bp"].astype(jnp.float32),
        )

    prepped = {m: prep(raw[m]) for m in models}
    stacked = jax.tree.map(lambda *xs: jnp.stack(xs, axis=0),
                           *(prepped[m] for m in models))
    per_model = {m: jax.tree.map(lambda a: a[None], prepped[m]) for m in models}
    return dict(arrays=stacked, per_model=per_model, models=tuple(models),
                inv_size=raw[models[0]]["wi"].shape[1],
                price_size=raw[models[0]]["wp"].shape[1])


def dqnet_forward(x, packed, model="online"):
    """Single-model forward. Returns (inv, prc) of shapes (batch, ni), (batch, np)."""
    inv, prc = _dqnet_pallas(x, packed["per_model"][model])
    return inv[0], prc[0]


def dqnet_forward_fused(x, packed):
    """Online + target in ONE launch. Returns (inv, prc) with leading model axis."""
    return _dqnet_pallas(x, packed["arrays"])


def dqnet_reference(x, raw, model="online", weight_dtype=jnp.float32):
    """Pure-JAX reference (mirrors the kernel's cast points)."""
    p = raw[model]

    def lin(h, w, b):
        return jnp.dot(h.astype(weight_dtype), w.astype(weight_dtype),
                       preferred_element_type=jnp.float32) + b

    h1 = jnp.maximum(lin(x, p["w1"], p["b1"]), 0.0)
    h2 = jnp.maximum(lin(h1, p["w2"], p["b2"]), 0.0)
    return lin(h2, p["wi"], p["bi"]), lin(h2, p["wp"], p["bp"])


if __name__ == "__main__":
    key = jax.random.PRNGKey(0)
    k_param, k_x = jax.random.split(key)

    batch = 2
    input_dim = 16
    inventory_actions = list(range(5))   # inventory_size = 5
    price_actions = list(range(7))       # price_size = 7

    raw = init_params(k_param, input_dim, len(inventory_actions), len(price_actions))
    x = jax.random.normal(k_x, (batch, input_dim), jnp.float32)

    # ---- f32 weights: exact comparison against reference --------------------
    packed_f32 = pack_params(raw, weight_dtype=jnp.float32)

    inv, prc = dqnet_forward(x, packed_f32, model="online")
    jax.block_until_ready((inv, prc))

    # online + target fused into a single pallas_call (grid over model axis)
    inv_all, prc_all = dqnet_forward_fused(x, packed_f32)
    jax.block_until_ready((inv_all, prc_all))

    inv_ref, prc_ref = dqnet_reference(x, raw, model="online")
    inv_ref_t, prc_ref_t = dqnet_reference(x, raw, model="target")

    assert inv.shape == (batch, len(inventory_actions))
    assert prc.shape == (batch, len(price_actions))
    assert jnp.allclose(inv, inv_ref, atol=1e-4, rtol=1e-4)
    assert jnp.allclose(prc, prc_ref, atol=1e-4, rtol=1e-4)
    assert jnp.allclose(inv_all[0], inv_ref, atol=1e-4, rtol=1e-4)
    assert jnp.allclose(prc_all[0], prc_ref, atol=1e-4, rtol=1e-4)
    assert jnp.allclose(inv_all[1], inv_ref_t, atol=1e-4, rtol=1e-4)
    assert jnp.allclose(prc_all[1], prc_ref_t, atol=1e-4, rtol=1e-4)

    # ---- bf16 weights (the default): halves weight DMA, full-rate MXU -------
    packed_bf16 = pack_params(raw)   # weight_dtype defaults to bfloat16
    inv_b, prc_b = dqnet_forward(x, packed_bf16, model="online")
    jax.block_until_ready((inv_b, prc_b))
    inv_rb, prc_rb = dqnet_reference(x, raw, model="online", weight_dtype=jnp.bfloat16)
    assert jnp.allclose(inv_b, inv_rb, atol=5e-2, rtol=5e-2)
    assert jnp.allclose(prc_b, prc_rb, atol=5e-2, rtol=5e-2)

    # ---- larger batch: exercises the row-tiled single-model grid (2 tiles) --
    big_batch = 512
    xb = jax.random.normal(jax.random.PRNGKey(1), (big_batch, input_dim), jnp.float32)
    inv_big, prc_big = dqnet_forward(xb, packed_f32, model="online")
    inv_big_f, prc_big_f = dqnet_forward_fused(xb, packed_f32)
    jax.block_until_ready((inv_big, prc_big, inv_big_f, prc_big_f))
    inv_big_ref, prc_big_ref = dqnet_reference(xb, raw, model="online")
    assert inv_big.shape == (big_batch, len(inventory_actions))
    assert prc_big.shape == (big_batch, len(price_actions))
    assert jnp.allclose(inv_big, inv_big_ref, atol=1e-3, rtol=1e-3)
    assert jnp.allclose(prc_big, prc_big_ref, atol=1e-3, rtol=1e-3)
    assert inv_big_f.shape == (2, big_batch, len(inventory_actions))
    assert prc_big_f.shape == (2, big_batch, len(price_actions))
    assert jnp.allclose(inv_big_f[0], inv_big_ref, atol=1e-3, rtol=1e-3)
    assert jnp.allclose(prc_big_f[0], prc_big_ref, atol=1e-3, rtol=1e-3)

    print("KERNEL_OK")
</pallas_src>

<mosaic_0001>
module attributes {stable_mosaic.version = 11 : i64} {
  func.func @dqnet_kernel(%arg0: i32, %arg1: memref<2x16xf32, #tpu.memory_space<vmem>>, %arg2: memref<1x16x256xf32, #tpu.memory_space<vmem>>, %arg3: memref<1x1x256xf32, #tpu.memory_space<vmem>>, %arg4: memref<1x256x256xf32, #tpu.memory_space<vmem>>, %arg5: memref<1x1x256xf32, #tpu.memory_space<vmem>>, %arg6: memref<1x256x5xf32, #tpu.memory_space<vmem>>, %arg7: memref<1x1x5xf32, #tpu.memory_space<vmem>>, %arg8: memref<1x256x7xf32, #tpu.memory_space<vmem>>, %arg9: memref<1x1x7xf32, #tpu.memory_space<vmem>>, %arg10: memref<1x2x5xf32, #tpu.memory_space<vmem>>, %arg11: memref<1x2x7xf32, #tpu.memory_space<vmem>>) attributes {dimension_semantics = [#tpu.dimension_semantics<parallel>], iteration_bounds = array<i64: 1>, scalar_prefetch = 0 : i64, scratch_operands = 0 : i64, tpu.core_type = #tpu.core_type<tc>, window_params = [{transform_indices = @transform_0, window_bounds = array<i64: 2, 16>}, {pipeline_mode = #tpu.pipeline_mode<synchronous>, transform_indices = @transform_1, window_bounds = array<i64: 1, 16, 256>}, {pipeline_mode = #tpu.pipeline_mode<synchronous>, transform_indices = @transform_2, window_bounds = array<i64: 1, 1, 256>}, {pipeline_mode = #tpu.pipeline_mode<synchronous>, transform_indices = @transform_3, window_bounds = array<i64: 1, 256, 256>}, {pipeline_mode = #tpu.pipeline_mode<synchronous>, transform_indices = @transform_4, window_bounds = array<i64: 1, 1, 256>}, {pipeline_mode = #tpu.pipeline_mode<synchronous>, transform_indices = @transform_5, window_bounds = array<i64: 1, 256, 5>}, {pipeline_mode = #tpu.pipeline_mode<synchronous>, transform_indices = @transform_6, window_bounds = array<i64: 1, 1, 5>}, {pipeline_mode = #tpu.pipeline_mode<synchronous>, transform_indices = @transform_7, window_bounds = array<i64: 1, 256, 7>}, {pipeline_mode = #tpu.pipeline_mode<synchronous>, transform_indices = @transform_8, window_bounds = array<i64: 1, 1, 7>}, {transform_indices = @transform_9, window_bounds = array<i64: 1, 2, 5>}, {transform_indices = @transform_10, window_bounds = array<i64: 1, 2, 7>}]} {
    %c0 = arith.constant 0 : index
    %c0_0 = arith.constant 0 : index
    %0 = vector.load %arg1[%c0, %c0_0] : memref<2x16xf32, #tpu.memory_space<vmem>>, vector<2x16xf32>
    %c0_1 = arith.constant 0 : index
    %c0_2 = arith.constant 0 : index
    %c0_3 = arith.constant 0 : index
    %1 = vector.load %arg2[%c0_1, %c0_2, %c0_3] : memref<1x16x256xf32, #tpu.memory_space<vmem>>, vector<1x16x256xf32>
    %2 = vector.shape_cast %1 : vector<1x16x256xf32> to vector<16x256xf32>
    %cst = arith.constant dense<0.000000e+00> : vector<2x256xf32>
    %3 = tpu.matmul %0, %2, %cst {dimension_numbers = #tpu.dot_dimension_numbers<[1], [0], [0], [1], [0, 0, 1, 1], [], []>} : vector<2x16xf32>, vector<16x256xf32>, vector<2x256xf32> -> vector<2x256xf32>
    %c0_4 = arith.constant 0 : index
    %c0_5 = arith.constant 0 : index
    %c0_6 = arith.constant 0 : index
    %4 = vector.load %arg3[%c0_4, %c0_5, %c0_6] : memref<1x1x256xf32, #tpu.memory_space<vmem>>, vector<1x1x256xf32>
    %5 = vector.shape_cast %4 : vector<1x1x256xf32> to vector<1x256xf32>
    %6 = vector.broadcast %5 : vector<1x256xf32> to vector<2x256xf32>
    %7 = arith.addf %3, %6 : vector<2x256xf32>
    %cst_7 = arith.constant 0.000000e+00 : f32
    %8 = vector.broadcast %cst_7 : f32 to vector<2x256xf32>
    %9 = arith.maximumf %7, %8 : vector<2x256xf32>
    %c0_8 = arith.constant 0 : index
    %c0_9 = arith.constant 0 : index
    %c0_10 = arith.constant 0 : index
    %10 = vector.load %arg4[%c0_8, %c0_9, %c0_10] : memref<1x256x256xf32, #tpu.memory_space<vmem>>, vector<1x256x256xf32>
    %11 = vector.shape_cast %10 : vector<1x256x256xf32> to vector<256x256xf32>
    %cst_11 = arith.constant dense<0.000000e+00> : vector<2x256xf32>
    %12 = tpu.matmul %9, %11, %cst_11 {dimension_numbers = #tpu.dot_dimension_numbers<[1], [0], [0], [1], [0, 0, 1, 1], [], []>} : vector<2x256xf32>, vector<256x256xf32>, vector<2x256xf32> -> vector<2x256xf32>
    %c0_12 = arith.constant 0 : index
    %c0_13 = arith.constant 0 : index
    %c0_14 = arith.constant 0 : index
    %13 = vector.load %arg5[%c0_12, %c0_13, %c0_14] : memref<1x1x256xf32, #tpu.memory_space<vmem>>, vector<1x1x256xf32>
    %14 = vector.shape_cast %13 : vector<1x1x256xf32> to vector<1x256xf32>
    %15 = vector.broadcast %14 : vector<1x256xf32> to vector<2x256xf32>
    %16 = arith.addf %12, %15 : vector<2x256xf32>
    %cst_15 = arith.constant 0.000000e+00 : f32
    %17 = vector.broadcast %cst_15 : f32 to vector<2x256xf32>
    %18 = arith.maximumf %16, %17 : vector<2x256xf32>
    %c0_16 = arith.constant 0 : index
    %c0_17 = arith.constant 0 : index
    %c0_18 = arith.constant 0 : index
    %19 = vector.load %arg6[%c0_16, %c0_17, %c0_18] : memref<1x256x5xf32, #tpu.memory_space<vmem>>, vector<1x256x5xf32>
    %20 = vector.shape_cast %19 : vector<1x256x5xf32> to vector<256x5xf32>
    %cst_19 = arith.constant dense<0.000000e+00> : vector<2x5xf32>
    %21 = tpu.matmul %18, %20, %cst_19 {dimension_numbers = #tpu.dot_dimension_numbers<[1], [0], [0], [1], [0, 0, 1, 1], [], []>} : vector<2x256xf32>, vector<256x5xf32>, vector<2x5xf32> -> vector<2x5xf32>
    %c0_20 = arith.constant 0 : index
    %c0_21 = arith.constant 0 : index
    %c0_22 = arith.constant 0 : index
    %22 = vector.load %arg7[%c0_20, %c0_21, %c0_22] : memref<1x1x5xf32, #tpu.memory_space<vmem>>, vector<1x1x5xf32>
    %23 = vector.shape_cast %22 : vector<1x1x5xf32> to vector<1x5xf32>
    %24 = vector.broadcast %23 : vector<1x5xf32> to vector<2x5xf32>
    %25 = arith.addf %21, %24 : vector<2x5xf32>
    %c0_23 = arith.constant 0 : index
    %c0_24 = arith.constant 0 : index
    %c0_25 = arith.constant 0 : index
    %26 = vector.load %arg8[%c0_23, %c0_24, %c0_25] : memref<1x256x7xf32, #tpu.memory_space<vmem>>, vector<1x256x7xf32>
    %27 = vector.shape_cast %26 : vector<1x256x7xf32> to vector<256x7xf32>
    %cst_26 = arith.constant dense<0.000000e+00> : vector<2x7xf32>
    %28 = tpu.matmul %18, %27, %cst_26 {dimension_numbers = #tpu.dot_dimension_numbers<[1], [0], [0], [1], [0, 0, 1, 1], [], []>} : vector<2x256xf32>, vector<256x7xf32>, vector<2x7xf32> -> vector<2x7xf32>
    %c0_27 = arith.constant 0 : index
    %c0_28 = arith.constant 0 : index
    %c0_29 = arith.constant 0 : index
    %29 = vector.load %arg9[%c0_27, %c0_28, %c0_29] : memref<1x1x7xf32, #tpu.memory_space<vmem>>, vector<1x1x7xf32>
    %30 = vector.shape_cast %29 : vector<1x1x7xf32> to vector<1x7xf32>
    %31 = vector.broadcast %30 : vector<1x7xf32> to vector<2x7xf32>
    %32 = arith.addf %28, %31 : vector<2x7xf32>
    %c0_30 = arith.constant 0 : index
    %c0_31 = arith.constant 0 : index
    %c0_32 = arith.constant 0 : index
    %33 = vector.load %arg10[%c0_30, %c0_31, %c0_32] : memref<1x2x5xf32, #tpu.memory_space<vmem>>, vector<1x2x5xf32>
    %34 = vector.shape_cast %33 : vector<1x2x5xf32> to vector<2x5xf32>
    %35 = vector.shape_cast %25 : vector<2x5xf32> to vector<1x2x5xf32>
    tpu.vector_store %arg10[%c0_30, %c0_31, %c0_32], %35 {strides = array<i32>} : memref<1x2x5xf32, #tpu.memory_space<vmem>>, vector<1x2x5xf32>,
    %c0_33 = arith.constant 0 : index
    %c0_34 = arith.constant 0 : index
    %c0_35 = arith.constant 0 : index
    %36 = vector.load %arg11[%c0_33, %c0_34, %c0_35] : memref<1x2x7xf32, #tpu.memory_space<vmem>>, vector<1x2x7xf32>
    %37 = vector.shape_cast %36 : vector<1x2x7xf32> to vector<2x7xf32>
    %38 = vector.shape_cast %32 : vector<2x7xf32> to vector<1x2x7xf32>
    tpu.vector_store %arg11[%c0_33, %c0_34, %c0_35], %38 {strides = array<i32>} : memref<1x2x7xf32, #tpu.memory_space<vmem>>, vector<1x2x7xf32>,
    return
  }
  func.func @transform_0(%arg0: i32) -> (i32, i32) {
    %c0_i32 = arith.constant 0 : i32
    %c0_i32_0 = arith.constant 0 : i32
    return %arg0, %c0_i32 : i32, i32
  }
  func.func @transform_1(%arg0: i32) -> (i32, i32, i32) {
    %c0_i32 = arith.constant 0 : i32
    %c0_i32_0 = arith.constant 0 : i32
    %c0_i32_1 = arith.constant 0 : i32
    %c0_i32_2 = arith.constant 0 : i32
    return %c0_i32, %c0_i32_0, %c0_i32_1 : i32, i32, i32
  }
  func.func @transform_2(%arg0: i32) -> (i32, i32, i32) {
    %c0_i32 = arith.constant 0 : i32
    %c0_i32_0 = arith.constant 0 : i32
    %c0_i32_1 = arith.constant 0 : i32
    %c0_i32_2 = arith.constant 0 : i32
    return %c0_i32, %c0_i32_0, %c0_i32_1 : i32, i32, i32
  }
  func.func @transform_3(%arg0: i32) -> (i32, i32, i32) {
    %c0_i32 = arith.constant 0 : i32
    %c0_i32_0 = arith.constant 0 : i32
    %c0_i32_1 = arith.constant 0 : i32
    %c0_i32_2 = arith.constant 0 : i32
    return %c0_i32, %c0_i32_0, %c0_i32_1 : i32, i32, i32
  }
  func.func @transform_4(%arg0: i32) -> (i32, i32, i32) {
    %c0_i32 = arith.constant 0 : i32
    %c0_i32_0 = arith.constant 0 : i32
    %c0_i32_1 = arith.constant 0 : i32
    %c0_i32_2 = arith.constant 0 : i32
    return %c0_i32, %c0_i32_0, %c0_i32_1 : i32, i32, i32
  }
  func.func @transform_5(%arg0: i32) -> (i32, i32, i32) {
    %c0_i32 = arith.constant 0 : i32
    %c0_i32_0 = arith.constant 0 : i32
    %c0_i32_1 = arith.constant 0 : i32
    %c0_i32_2 = arith.constant 0 : i32
    return %c0_i32, %c0_i32_0, %c0_i32_1 : i32, i32, i32
  }
  func.func @transform_6(%arg0: i32) -> (i32, i32, i32) {
    %c0_i32 = arith.constant 0 : i32
    %c0_i32_0 = arith.constant 0 : i32
    %c0_i32_1 = arith.constant 0 : i32
    %c0_i32_2 = arith.constant 0 : i32
    return %c0_i32, %c0_i32_0, %c0_i32_1 : i32, i32, i32
  }
  func.func @transform_7(%arg0: i32) -> (i32, i32, i32) {
    %c0_i32 = arith.constant 0 : i32
    %c0_i32_0 = arith.constant 0 : i32
    %c0_i32_1 = arith.constant 0 : i32
    %c0_i32_2 = arith.constant 0 : i32
    return %c0_i32, %c0_i32_0, %c0_i32_1 : i32, i32, i32
  }
  func.func @transform_8(%arg0: i32) -> (i32, i32, i32) {
    %c0_i32 = arith.constant 0 : i32
    %c0_i32_0 = arith.constant 0 : i32
    %c0_i32_1 = arith.constant 0 : i32
    %c0_i32_2 = arith.constant 0 : i32
    return %c0_i32, %c0_i32_0, %c0_i32_1 : i32, i32, i32
  }
  func.func @transform_9(%arg0: i32) -> (i32, i32, i32) {
    %c0_i32 = arith.constant 0 : i32
    %c0_i32_0 = arith.constant 0 : i32
    %c0_i32_1 = arith.constant 0 : i32
    return %c0_i32, %arg0, %c0_i32_0 : i32, i32, i32
  }
  func.func @transform_10(%arg0: i32) -> (i32, i32, i32) {
    %c0_i32 = arith.constant 0 : i32
    %c0_i32_0 = arith.constant 0 : i32
    %c0_i32_1 = arith.constant 0 : i32
    return %c0_i32, %arg0, %c0_i32_0 : i32, i32, i32
  }
}

</mosaic_0001>

<bundles_post_ra>
// kernel: tpu_custom_call.1
= control target key start
LH: loop header
LB: loop body
LE: loop exit
PB: predicated region body
PF: predicated region fallthrough
CT: control target
= control target key end

     0   :  { %16 = vsyncpa [#allocation3], 0  ;;  %s1005_s0 = inlined_call_operand.vmem [shape: f32[2,16], index: 0, kind: input, shape index: {}]   ;;  %s1006_s1 = inlined_call_operand.hbm [shape: f32[1,16,256], index: 1, kind: input, shape index: {}]   ;;  %s1007_s2 = inlined_call_operand.vmem [shape: f32[1,1,256], index: 2, kind: input, shape index: {}]   ;;  %s1008_s3 = inlined_call_operand.vmem [shape: f32[1,256,256], index: 3, kind: input, shape index: {}]   ;;  %s1009_s4 = inlined_call_operand.vmem [shape: f32[1,1,256], index: 4, kind: input, shape index: {}]   ;;  %s1010_s5 = inlined_call_operand.vmem [shape: f32[1,256,5], index: 5, kind: input, shape index: {}]   ;;  %s1011_s6 = inlined_call_operand.vmem [shape: f32[1,1,5], index: 6, kind: input, shape index: {}]   ;;  %s1012_s7 = inlined_call_operand.vmem [shape: f32[1,256,7], index: 7, kind: input, shape index: {}]   ;;  %s1013_s8 = inlined_call_operand.vmem [shape: f32[1,1,7], index: 8, kind: input, shape index: {}]   ;;  %s1014_s9 = inlined_call_operand.hbm [shape: f32[1,2,5], index: 9, kind: output, shape index: {0}]   ;;  %s1015_s10 = inlined_call_operand.hbm [shape: f32[1,2,7], index: 10, kind: output, shape index: {1}]  }
   0x1   :  { %17 = vsyncpa [#allocation4], 0 }
   0x2   :  { %18 = vsyncpa [#allocation7], 0  ;;  %s25_s15 = sshll.u32 %s1006_s1, 4  ;;  %s537_s16 = smov [#allocation2]   ;;  %s26_s15 = int_to_ptr.hbm [resolvable:$true] %s25_s15 }
   0x3   :  { %s27_s17 = sshll.u32 %s537_s16, 4  ;;  %s538_s18 = smov 256   ;;  %s28_s17 = int_to_ptr.vmem [resolvable:$true] %s27_s17 }
   0x4   :  { %s539_s19 = smov 16  }
   0x5   :  { %33 = dma.hbm_to_vmem [thread:$0]  %s26_s15, 512, %s28_s17, [#allocation3], %s538_s18, %s538_s18, %s539_s19  }
   0x6   :  { %531 = dma.done.wait [#allocation3], 512  }
   0x7   :  { %532 = vsyncadd [#allocation3], 4294966784  ;;  %v55_v0 = vld [vmem:[#allocation2 + $0x10] sm:$0xff]  ;;  %v53_v1 = vld [vmem:[#allocation2] sm:$0xff]  ;;  %vm63_vm0 = vcmask 130048   ;;  %s435_s12 = sshll.u32 %s1015_s10, 4  ;;  %s436_s12 = int_to_ptr.hbm [resolvable:$true] %s435_s12 }
   0x8   :  { %v56_v2 = vld [vmem:[#allocation2 + $0x18] sm:$0xff]  ;;  %81 = vmatpush.msra.mxu0 %v55_v0  ;;  %v52_v3 = vld [vmem:[%s1005_s0] sm:$0x3]  ;;  %v54_v4 = vld [vmem:[#allocation2 + $0x8] sm:$0xff]  ;;  %vm415_vm1 = vcmask 50176   ;;  %s541_s15 = smov [#allocation5]  }
   0x9   :  { %101 = vmatpush.msra.mxu1 %v56_v2  ;;  %v139_v5 = vld [vmem:[%s1008_s3 + $0xf0] sm:$0xff]  ;;  %v140_v6 = vld [vmem:[%s1008_s3 + $0xf8] sm:$0xff]  ;;  %v137_v7 = vld [vmem:[%s1008_s3 + $0xe0] sm:$0xff]  ;;  %s422_s16 = sshll.u32 %s541_s15, 4  ;;  %s424_s18 = sshll.u32 %s1014_s9, 4  ;;  %vm413_vm2 = vcmask 33792   ;;  %s423_s16 = int_to_ptr.vmem [resolvable:$true] %s422_s16  ;;  %s425_s18 = int_to_ptr.hbm [resolvable:$true] %s424_s18 }
   0xa   :  { %179 = vmatpush.msra.mxu2 %v139_v5  ;;  %82 = vmatpush.msra.mxu0 %v53_v1  ;;  %v171_v8 = vld [vmem:[%s1008_s3 + $0x1f0] sm:$0xff]  ;;  %v172_v9 = vld [vmem:[%s1008_s3 + $0x1f8] sm:$0xff]  ;;  %v138_v10 = vld [vmem:[%s1008_s3 + $0xe8] sm:$0xff] }
   0xb   :  { %102 = vmatpush.msra.mxu1 %v54_v4  ;;  %450 = vmatmul.msk.f32.vlgmr.msra.gmra.mxu0 %vm63_vm0, %v52_v3  ;;  %v135_v11 = vld [vmem:[%s1008_s3 + $0xd0] sm:$0xff]  ;;  %v169_v12 = vld [vmem:[%s1008_s3 + $0x1e0] sm:$0xff]  ;;  %v170_v13 = vld [vmem:[%s1008_s3 + $0x1e8] sm:$0xff] }
   0xc   :  { %451 = vmatmul.msk.f32.vlgmr.msra.gmra.mxu1 %vm63_vm0, %v52_v3  ;;  %219 = vmatpush.msrb.mxu0 %v140_v6  ;;  %v136_v14 = vld [vmem:[%s1008_s3 + $0xd8] sm:$0xff]  ;;  %v133_v15 = vld [vmem:[%s1008_s3 + $0xc0] sm:$0xff]  ;;  %v167_v16 = vld [vmem:[%s1008_s3 + $0x1d0] sm:$0xff] }
   0xd   :  { %180 = vmatpush.msra.mxu2 %v137_v7  ;;  %199 = vmatpush.msra.mxu3 %v171_v8  ;;  %v168_v17 = vld [vmem:[%s1008_s3 + $0x1d8] sm:$0xff]  ;;  %v134_v18 = vld [vmem:[%s1008_s3 + $0xc8] sm:$0xff]  ;;  %v131_v19 = vld [vmem:[%s1008_s3 + $0xb0] sm:$0xff] }
   0xe   :  { %239 = vmatpush.msrb.mxu1 %v172_v9  ;;  %220 = vmatpush.msrb.mxu0 %v138_v10  ;;  %v165_v20 = vld [vmem:[%s1008_s3 + $0x1c0] sm:$0xff]  ;;  %v166_v21 = vld [vmem:[%s1008_s3 + $0x1c8] sm:$0xff]  ;;  %v132_v22 = vld [vmem:[%s1008_s3 + $0xb8] sm:$0xff] }
   0xf   :  { %181 = vmatpush.msra.mxu2 %v135_v11  ;;  %200 = vmatpush.msra.mxu3 %v169_v12  ;;  %v129_v23 = vld [vmem:[%s1008_s3 + $0xa0] sm:$0xff]  ;;  %v163_v24 = vld [vmem:[%s1008_s3 + $0x1b0] sm:$0xff]  ;;  %v164_v25 = vld [vmem:[%s1008_s3 + $0x1b8] sm:$0xff] }
  0x10   :  { %240 = vmatpush.msrb.mxu1 %v170_v13  ;;  %221 = vmatpush.msrb.mxu0 %v136_v14  ;;  %v130_v26 = vld [vmem:[%s1008_s3 + $0xa8] sm:$0xff]  ;;  %v127_v27 = vld [vmem:[%s1008_s3 + $0x90] sm:$0xff]  ;;  %v161_v28 = vld [vmem:[%s1008_s3 + $0x1a0] sm:$0xff] }
  0x11   :  { %182 = vmatpush.msra.mxu2 %v133_v15  ;;  %201 = vmatpush.msra.mxu3 %v167_v16  ;;  %v162_v29 = vld [vmem:[%s1008_s3 + $0x1a8] sm:$0xff]  ;;  %v128_v30 = vld [vmem:[%s1008_s3 + $0x98] sm:$0xff]  ;;  %v125_v31 = vld [vmem:[%s1008_s3 + $0x80] sm:$0xff] }
  0x12   :  { %241 = vmatpush.msrb.mxu1 %v168_v17  ;;  %222 = vmatpush.msrb.mxu0 %v134_v18  ;;  %v159_v32 = vld [vmem:[%s1008_s3 + $0x190] sm:$0xff]  ;;  %v160_v33 = vld [vmem:[%s1008_s3 + $0x198] sm:$0xff]  ;;  %v126_v34 = vld [vmem:[%s1008_s3 + $0x88] sm:$0xff] }
  0x13   :  { %183 = vmatpush.msra.mxu2 %v131_v19  ;;  %202 = vmatpush.msra.mxu3 %v165_v20  ;;  %v123_v35 = vld [vmem:[%s1008_s3 + $0x70] sm:$0xff]  ;;  %v157_v36 = vld [vmem:[%s1008_s3 + $0x180] sm:$0xff]  ;;  %v158_v37 = vld [vmem:[%s1008_s3 + $0x188] sm:$0xff] }
  0x14   :  { %242 = vmatpush.msrb.mxu1 %v166_v21  ;;  %223 = vmatpush.msrb.mxu0 %v132_v22  ;;  %v124_v38 = vld [vmem:[%s1008_s3 + $0x78] sm:$0xff]  ;;  %v121_v39 = vld [vmem:[%s1008_s3 + $0x60] sm:$0xff]  ;;  %v155_v40 = vld [vmem:[%s1008_s3 + $0x170] sm:$0xff] }
  0x15   :  { %184 = vmatpush.msra.mxu2 %v129_v23  ;;  %203 = vmatpush.msra.mxu3 %v163_v24  ;;  %v156_v41 = vld [vmem:[%s1008_s3 + $0x178] sm:$0xff]  ;;  %v122_v42 = vld [vmem:[%s1008_s3 + $0x68] sm:$0xff]  ;;  %v119_v43 = vld [vmem:[%s1008_s3 + $0x50] sm:$0xff] }
  0x16   :  { %243 = vmatpush.msrb.mxu1 %v164_v25  ;;  %224 = vmatpush.msrb.mxu0 %v130_v26  ;;  %v153_v44 = vld [vmem:[%s1008_s3 + $0x160] sm:$0xff]  ;;  %v154_v45 = vld [vmem:[%s1008_s3 + $0x168] sm:$0xff]  ;;  %v120_v46 = vld [vmem:[%s1008_s3 + $0x58] sm:$0xff] }
  0x17   :  { %185 = vmatpush.msra.mxu2 %v127_v27  ;;  %204 = vmatpush.msra.mxu3 %v161_v28  ;;  %v117_v47 = vld [vmem:[%s1008_s3 + $0x40] sm:$0xff]  ;;  %v151_v48 = vld [vmem:[%s1008_s3 + $0x150] sm:$0xff]  ;;  %v152_v49 = vld [vmem:[%s1008_s3 + $0x158] sm:$0xff] }
  0x18   :  { %244 = vmatpush.msrb.mxu1 %v162_v29  ;;  %225 = vmatpush.msrb.mxu0 %v128_v30  ;;  %v118_v50 = vld [vmem:[%s1008_s3 + $0x48] sm:$0xff]  ;;  %v115_v51 = vld [vmem:[%s1008_s3 + $0x30] sm:$0xff]  ;;  %v149_v52 = vld [vmem:[%s1008_s3 + $0x140] sm:$0xff] }
  0x19   :  { %186 = vmatpush.msra.mxu2 %v125_v31  ;;  %205 = vmatpush.msra.mxu3 %v159_v32  ;;  %v150_v53 = vld [vmem:[%s1008_s3 + $0x148] sm:$0xff]  ;;  %v116_v54 = vld [vmem:[%s1008_s3 + $0x38] sm:$0xff]  ;;  %v113_v55 = vld [vmem:[%s1008_s3 + $0x20] sm:$0xff] }
  0x1a   :  { %245 = vmatpush.msrb.mxu1 %v160_v33  ;;  %226 = vmatpush.msrb.mxu0 %v126_v34  ;;  %v147_v56 = vld [vmem:[%s1008_s3 + $0x130] sm:$0xff]  ;;  %v114_v57 = vld [vmem:[%s1008_s3 + $0x28] sm:$0xff]  ;;  %v148_v58 = vld [vmem:[%s1008_s3 + $0x138] sm:$0xff] }
  0x1b   :  { %187 = vmatpush.msra.mxu2 %v123_v35  ;;  %206 = vmatpush.msra.mxu3 %v157_v36  ;;  %v111_v59 = vld [vmem:[%s1008_s3 + $0x10] sm:$0xff]  ;;  %v145_v60 = vld [vmem:[%s1008_s3 + $0x120] sm:$0xff]  ;;  %v112_v61 = vld [vmem:[%s1008_s3 + $0x18] sm:$0xff] }
  0x1c   :  { %246 = vmatpush.msrb.mxu1 %v158_v37  ;;  %227 = vmatpush.msrb.mxu0 %v124_v38  ;;  %v146_v62 = vld [vmem:[%s1008_s3 + $0x128] sm:$0xff]  ;;  %v109_v63 = vld [vmem:[%s1008_s3] sm:$0xff]  ;;  %v143_v0 = vld [vmem:[%s1008_s3 + $0x110] sm:$0xff] }
  0x1d   :  { %188 = vmatpush.msra.mxu2 %v121_v39  ;;  %207 = vmatpush.msra.mxu3 %v155_v40  ;;  %v110_v1 = vld [vmem:[%s1008_s3 + $0x8] sm:$0xff]  ;;  %v144_v2 = vld [vmem:[%s1008_s3 + $0x118] sm:$0xff]  ;;  %v141_v3 = vld [vmem:[%s1008_s3 + $0x100] sm:$0xff] }
  0x1e   :  { %247 = vmatpush.msrb.mxu1 %v156_v41  ;;  %228 = vmatpush.msrb.mxu0 %v122_v42  ;;  %v142_v4 = vld [vmem:[%s1008_s3 + $0x108] sm:$0xff]  ;;  %v292_v5 = vld [vmem:[%s1010_s5 + $0xf8] sm:$0xff]  ;;  %v291_v7 = vld [vmem:[%s1010_s5 + $0xf0] sm:$0xff] }
  0x1f   :  { %189 = vmatpush.msra.mxu2 %v119_v43  ;;  %208 = vmatpush.msra.mxu3 %v153_v44  ;;  %v368_v6 = vld [vmem:[%s1012_s7 + $0xf8] sm:$0xff]  ;;  %v367_v8 = vld [vmem:[%s1012_s7 + $0xf0] sm:$0xff]  ;;  %v290_v9 = vld [vmem:[%s1010_s5 + $0xe8] sm:$0xff] }
  0x20   :  { %248 = vmatpush.msrb.mxu1 %v154_v45  ;;  %229 = vmatpush.msrb.mxu0 %v120_v46  ;;  %v276_v10 = vld [vmem:[%s1010_s5 + $0x78] sm:$0xff]  ;;  %v366_v12 = vld [vmem:[%s1012_s7 + $0xe8] sm:$0xff]  ;;  %v275_v13 = vld [vmem:[%s1010_s5 + $0x70] sm:$0xff] }
  0x21   :  { %190 = vmatpush.msra.mxu2 %v117_v47  ;;  %209 = vmatpush.msra.mxu3 %v151_v48  ;;  %v352_v11 = vld [vmem:[%s1012_s7 + $0x78] sm:$0xff]  ;;  %v289_v14 = vld [vmem:[%s1010_s5 + $0xe0] sm:$0xff]  ;;  %v351_v15 = vld [vmem:[%s1012_s7 + $0x70] sm:$0xff] }
  0x22   :  { %249 = vmatpush.msrb.mxu1 %v152_v49  ;;  %230 = vmatpush.msrb.mxu0 %v118_v50  ;;  %v274_v16 = vld [vmem:[%s1010_s5 + $0x68] sm:$0xff]  ;;  %v365_v17 = vld [vmem:[%s1012_s7 + $0xe0] sm:$0xff]  ;;  %v288_v19 = vld [vmem:[%s1010_s5 + $0xd8] sm:$0xff] }
  0x23   :  { %191 = vmatpush.msra.mxu2 %v115_v51  ;;  %210 = vmatpush.msra.mxu3 %v149_v52  ;;  %v350_v18 = vld [vmem:[%s1012_s7 + $0x68] sm:$0xff]  ;;  %v273_v20 = vld [vmem:[%s1010_s5 + $0x60] sm:$0xff]  ;;  %v364_v21 = vld [vmem:[%s1012_s7 + $0xd8] sm:$0xff] }
  0x24   :  { %250 = vmatpush.msrb.mxu1 %v150_v53  ;;  %231 = vmatpush.msrb.mxu0 %v116_v54  ;;  %v349_v22 = vld [vmem:[%s1012_s7 + $0x60] sm:$0xff]  ;;  %v287_v23 = vld [vmem:[%s1010_s5 + $0xd0] sm:$0xff]  ;;  %v272_v24 = vld [vmem:[%s1010_s5 + $0x58] sm:$0xff] }
  0x25   :  { %192 = vmatpush.msra.mxu2 %v113_v55  ;;  %211 = vmatpush.msra.mxu3 %v147_v56  ;;  %v363_v25 = vld [vmem:[%s1012_s7 + $0xd0] sm:$0xff]  ;;  %v348_v26 = vld [vmem:[%s1012_s7 + $0x58] sm:$0xff]  ;;  %v286_v27 = vld [vmem:[%s1010_s5 + $0xc8] sm:$0xff] }
  0x26   :  { %232 = vmatpush.msrb.mxu0 %v114_v57  ;;  %251 = vmatpush.msrb.mxu1 %v148_v58  ;;  %v271_v28 = vld [vmem:[%s1010_s5 + $0x50] sm:$0xff]  ;;  %v362_v29 = vld [vmem:[%s1012_s7 + $0xc8] sm:$0xff]  ;;  %v285_v31 = vld [vmem:[%s1010_s5 + $0xc0] sm:$0xff] }
  0x27   :  { %193 = vmatpush.msra.mxu2 %v111_v59  ;;  %212 = vmatpush.msra.mxu3 %v145_v60  ;;  %v347_v30 = vld [vmem:[%s1012_s7 + $0x50] sm:$0xff]  ;;  %v270_v32 = vld [vmem:[%s1010_s5 + $0x48] sm:$0xff]  ;;  %v361_v33 = vld [vmem:[%s1012_s7 + $0xc0] sm:$0xff] }
  0x28   :  { %233 = vmatpush.msrb.mxu0 %v112_v61  ;;  %252 = vmatpush.msrb.mxu1 %v146_v62  ;;  %v346_v34 = vld [vmem:[%s1012_s7 + $0x48] sm:$0xff]  ;;  %v284_v35 = vld [vmem:[%s1010_s5 + $0xb8] sm:$0xff]  ;;  %v269_v36 = vld [vmem:[%s1010_s5 + $0x40] sm:$0xff] }
  0x29   :  { %194 = vmatpush.msra.mxu2 %v109_v63  ;;  %213 = vmatpush.msra.mxu3 %v143_v0  ;;  %v360_v37 = vld [vmem:[%s1012_s7 + $0xb8] sm:$0xff]  ;;  %v345_v38 = vld [vmem:[%s1012_s7 + $0x40] sm:$0xff]  ;;  %v283_v39 = vld [vmem:[%s1010_s5 + $0xb0] sm:$0xff] }
  0x2a   :  { %234 = vmatpush.msrb.mxu0 %v110_v1  ;;  %253 = vmatpush.msrb.mxu1 %v144_v2  ;;  %v268_v40 = vld [vmem:[%s1010_s5 + $0x38] sm:$0xff]  ;;  %v359_v41 = vld [vmem:[%s1012_s7 + $0xb0] sm:$0xff]  ;;  %v282_v43 = vld [vmem:[%s1010_s5 + $0xa8] sm:$0xff] }
  0x2b   :  { %214 = vmatpush.msra.mxu3 %v141_v3  ;;  %297 = vmatpush.msrb.mxu2 %v276_v10  ;;  %v344_v42 = vld [vmem:[%s1012_s7 + $0x38] sm:$0xff]  ;;  %v358_v44 = vld [vmem:[%s1012_s7 + $0xa8] sm:$0xff]  ;;  %v57_v45 = vld [vmem:[%s1007_s2] sm:$0x3] }
  0x2c   :  { %254 = vmatpush.msrb.mxu1 %v142_v4  ;;  %373 = vmatpush.msra.mxu0 %v352_v11  ;;  %v281_v46 = vld [vmem:[%s1010_s5 + $0xa0] sm:$0xff]  ;;  %v59_v48 = vperm.slane %v57_v45, 0  ;;  %v60_v49 = vperm.slane %v57_v45, 1  ;;  %v267_v56 = vld [vmem:[%s1010_s5 + $0x30] sm:$0xff]  ;;  %v280_v57 = vld [vmem:[%s1010_s5 + $0x98] sm:$0xff] }
  0x2d   :  { %317 = vmatpush.msrb.mxu3 %v292_v5  ;;  %298 = vmatpush.msrb.mxu2 %v275_v13  ;;  %v357_v47 = vld [vmem:[%s1012_s7 + $0xa0] sm:$0xff]  ;;  %v343_v58 = vld [vmem:[%s1012_s7 + $0x30] sm:$0xff]  ;;  %v356_v59 = vld [vmem:[%s1012_s7 + $0x98] sm:$0xff] }
  0x2e   :  { %393 = vmatpush.msra.mxu1 %v368_v6  ;;  %374 = vmatpush.msra.mxu0 %v351_v15  ;;  %v266_v60 = vld [vmem:[%s1010_s5 + $0x28] sm:$0xff]  ;;  %v279_v61 = vld [vmem:[%s1010_s5 + $0x90] sm:$0xff]  ;;  %v265_v0 = vld [vmem:[%s1010_s5 + $0x20] sm:$0xff] }
  0x2f   :  { %318 = vmatpush.msrb.mxu3 %v291_v7  ;;  %299 = vmatpush.msrb.mxu2 %v274_v16  ;;  %v342_v62 = vld [vmem:[%s1012_s7 + $0x28] sm:$0xff]  ;;  %v355_v63 = vld [vmem:[%s1012_s7 + $0x90] sm:$0xff]  ;;  %v341_v2 = vld [vmem:[%s1012_s7 + $0x20] sm:$0xff] }
  0x30   :  { %394 = vmatpush.msra.mxu1 %v367_v8  ;;  %375 = vmatpush.msra.mxu0 %v350_v18  ;;  %v278_v1 = vld [vmem:[%s1010_s5 + $0x88] sm:$0xff]  ;;  %v264_v4 = vld [vmem:[%s1010_s5 + $0x18] sm:$0xff]  ;;  %v277_v5 = vld [vmem:[%s1010_s5 + $0x80] sm:$0xff] }
  0x31   :  { %319 = vmatpush.msrb.mxu3 %v290_v9  ;;  %300 = vmatpush.msrb.mxu2 %v273_v20  ;;  %v354_v3 = vld [vmem:[%s1012_s7 + $0x88] sm:$0xff]  ;;  %v340_v6 = vld [vmem:[%s1012_s7 + $0x18] sm:$0xff]  ;;  %v353_v7 = vld [vmem:[%s1012_s7 + $0x80] sm:$0xff] }
  0x32   :  { %395 = vmatpush.msra.mxu1 %v366_v12  ;;  %376 = vmatpush.msra.mxu0 %v349_v22  ;;  %v263_v8 = vld [vmem:[%s1010_s5 + $0x10] sm:$0xff]  ;;  %v262_v10 = vld [vmem:[%s1010_s5 + $0x8] sm:$0xff]  ;;  %v261_v12 = vld [vmem:[%s1010_s5] sm:$0xff] }
  0x33   :  { %320 = vmatpush.msrb.mxu3 %v289_v14  ;;  %301 = vmatpush.msrb.mxu2 %v272_v24  ;;  %v339_v9 = vld [vmem:[%s1012_s7 + $0x10] sm:$0xff]  ;;  %v338_v11 = vld [vmem:[%s1012_s7 + $0x8] sm:$0xff]  ;;  %v337_v13 = vld [vmem:[%s1012_s7] sm:$0xff] }
  0x34   :  { %396 = vmatpush.msra.mxu1 %v365_v17  ;;  %377 = vmatpush.msra.mxu0 %v348_v26  ;;  %v173_v14 = vld [vmem:[%s1009_s4] sm:$0x3]  ;;  %s540_s4 = smov [#allocation6]  }
  0x35   :  { %321 = vmatpush.msrb.mxu3 %v288_v19  ;;  %302 = vmatpush.msrb.mxu2 %v271_v28  ;;  %v176_v15 = vperm.slane %v173_v14, 1  ;;  %v175_v20 = vperm.slane %v173_v14, 0  ;;  %s433_s30 = sshll.u32 %s540_s4, 4  ;;  %s434_s30 = int_to_ptr.vmem [resolvable:$true] %s433_s30 }
  0x36   :  { %397 = vmatpush.msra.mxu1 %v364_v21  ;;  %378 = vmatpush.msra.mxu0 %v347_v30 }
  0x37   :  { %322 = vmatpush.msrb.mxu3 %v287_v23  ;;  %303 = vmatpush.msrb.mxu2 %v270_v32  ;;  %v458_v32 = vld [vmem:[%s1011_s6] ss:$0 sm:$0xff] }
  0x38   :  { %398 = vmatpush.msra.mxu1 %v363_v25  ;;  %379 = vmatpush.msra.mxu0 %v346_v34 }
  0x39   :  { %323 = vmatpush.msrb.mxu3 %v286_v27  ;;  %304 = vmatpush.msrb.mxu2 %v269_v36  ;;  %v457_v27 = vld [vmem:[%s1013_s8] ss:$0 sm:$0xff] }
  0x3a   :  { %399 = vmatpush.msra.mxu1 %v362_v29  ;;  %380 = vmatpush.msra.mxu0 %v345_v38 }
  0x3b   :  { %324 = vmatpush.msrb.mxu3 %v285_v31  ;;  %305 = vmatpush.msrb.mxu2 %v268_v40 }
  0x3c   :  { %400 = vmatpush.msra.mxu1 %v361_v33  ;;  %381 = vmatpush.msra.mxu0 %v344_v42 }
  0x3d   :  { %325 = vmatpush.msrb.mxu3 %v284_v35  ;;  %306 = vmatpush.msrb.mxu2 %v267_v56 }
  0x3e   :  { %401 = vmatpush.msra.mxu1 %v360_v37  ;;  %382 = vmatpush.msra.mxu0 %v343_v58 }
  0x3f   :  { %326 = vmatpush.msrb.mxu3 %v283_v39  ;;  %307 = vmatpush.msrb.mxu2 %v266_v60 }
  0x40   :  { %402 = vmatpush.msra.mxu1 %v359_v41  ;;  %383 = vmatpush.msra.mxu0 %v342_v62 }
  0x41   :  { %327 = vmatpush.msrb.mxu3 %v282_v43  ;;  %308 = vmatpush.msrb.mxu2 %v265_v0 }
  0x42   :  { %403 = vmatpush.msra.mxu1 %v358_v44  ;;  %384 = vmatpush.msra.mxu0 %v341_v2 }
  0x43   :  { %328 = vmatpush.msrb.mxu3 %v281_v46  ;;  %309 = vmatpush.msrb.mxu2 %v264_v4 }
  0x44   :  { %404 = vmatpush.msra.mxu1 %v357_v47  ;;  %385 = vmatpush.msra.mxu0 %v340_v6 }
  0x45   :  { %329 = vmatpush.msrb.mxu3 %v280_v57  ;;  %310 = vmatpush.msrb.mxu2 %v263_v8 }
  0x46   :  { %405 = vmatpush.msra.mxu1 %v356_v59  ;;  %386 = vmatpush.msra.mxu0 %v339_v9 }
  0x47   :  { %330 = vmatpush.msrb.mxu3 %v279_v61  ;;  %311 = vmatpush.msrb.mxu2 %v262_v10 }
  0x48   :  { %406 = vmatpush.msra.mxu1 %v355_v63  ;;  %387 = vmatpush.msra.mxu0 %v338_v11 }
  0x49   :  { %331 = vmatpush.msrb.mxu3 %v278_v1  ;;  %312 = vmatpush.msrb.mxu2 %v261_v12 }
  0x4a   :  { %407 = vmatpush.msra.mxu1 %v354_v3  ;;  %388 = vmatpush.msra.mxu0 %v337_v13 }
  0x4b   :  { %332 = vmatpush.msrb.mxu3 %v277_v5 }
  0x4c   :  { %408 = vmatpush.msra.mxu1 %v353_v7 }
  0x88   :  { %v84_v50 = vpop.f32.mrf.mxu0 }
  0x89   :  { %v104_v51 = vpop.f32.mrf.mxu1  ;;  %v85_v52 = vadd.f32 %v84_v50, %v59_v48 }
  0x8a   :  { %v105_v53 = vadd.f32 %v104_v51, %v60_v49 }
  0x8b   :  { %v107_v54 = vmax.f32 %v85_v52, 0.0 }
  0x8c   :  { %v108_v55 = vmax.f32 %v105_v53, 0.0 }
  0x8d   :  { %195 = vmatmul.f32.vlgmr.msra.gmra.mxu2 %v107_v54  ;;  %235 = vmatmul.f32.vlgmr.msrb.gmra.mxu0 %v107_v54 }
  0x8e   :  { %215 = vmatmul.f32.vlgmr.msra.gmra.mxu3 %v108_v55  ;;  %255 = vmatmul.f32.vlgmr.msrb.gmra.mxu1 %v108_v55 }
 0x10a   :  { %v236_v16 = vpop.f32.mrf.mxu0 }
 0x10b   :  { %v237_v17 = vadd.f32 %v236_v16, %v176_v15  ;;  %v256_v18 = vpop.f32.mrf.mxu1 }
 0x10d   :  { %v257_v19 = vadd.f32 %v256_v18, %v237_v17 }
 0x10f   :  { %v260_v21 = vmax.f32 %v257_v19, 0.0 }
 0x110   :  { %v196_v22 = vpop.f32.mrf.mxu2 }
 0x111   :  { %v197_v23 = vadd.f32 %v196_v22, %v175_v20  ;;  %333 = vmatmul.f32.vlgmr.msrb.gmra.mxu3 %v260_v21  ;;  %409 = vmatmul.f32.vlgmr.msra.gmra.mxu1 %v260_v21  ;;  %v216_v24 = vpop.f32.mrf.mxu3 }
 0x113   :  { %v217_v25 = vadd.f32 %v216_v24, %v197_v23 }
 0x115   :  { %v259_v26 = vmax.f32 %v217_v25, 0.0 }
 0x117   :  { %313 = vmatmul.f32.vlgmr.msrb.gmra.mxu2 %v259_v26  ;;  %389 = vmatmul.f32.vlgmr.msra.gmra.mxu0 %v259_v26 }
 0x18e   :  { %v410_v30 = vpop.f32.mrf.mxu1 }
 0x194   :  { %v390_v28 = vpop.f32.mrf.mxu0  ;;  %v334_v35 = vpop.f32.mrf.mxu3 }
 0x195   :  { %v391_v29 = vadd.f32 %v457_v27, %v390_v28 }
 0x197   :  { %v411_v31 = vadd.f32 %v410_v30, %v391_v29 }
 0x199   :  { %416 = vst.msk [vmem:[#allocation6] sm:$0x3] %vm415_vm1, %v411_v31 }
 0x19a   :  { %v314_v33 = vpop.f32.mrf.mxu2  ;;  %438 = dma.vmem_to_hbm [thread:$0]  %s434_s30, 32, %s436_s12, [#allocation7]  }
 0x19b   :  { %v315_v34 = vadd.f32 %v458_v32, %v314_v33 }
 0x19d   :  { %v335_v36 = vadd.f32 %v334_v35, %v315_v34 }
 0x19f   :  { %414 = vst.msk [vmem:[#allocation5] sm:$0x3] %vm413_vm2, %v335_v36 }
 0x1a0   :  { %427 = dma.vmem_to_hbm [thread:$0]  %s423_s16, 32, %s425_s18, [#allocation4]  }
 0x1a1   :  { %533 = dma.done.wait [#allocation4], 32  }
 0x1a2   :  { %534 = vsyncadd [#allocation4], 4294967264 }
 0x1a3   :  { %535 = dma.done.wait [#allocation7], 32  }
 0x1a4   :  { %536 = vsyncadd [#allocation7], 4294967264 }
 0x1a5   :  { %447 = vsyncpa [#allocation3], 1 }
 0x1a6   :  { %448 = vsyncpa [#allocation4], 1 }
 0x1a7   :  { %449 = vsyncpa [#allocation7], 1 }

</bundles_post_ra>
